<compile_context>
chip_gen: v6e
topology: v6e:2x2x1
jax: 0.10.0
libtpu: 0.0.40
codegen_flags: <defaults>
</compile_context>

<pallas_src>
import functools

import jax
import jax.numpy as jnp
from jax import lax
from jax.experimental import pallas as pl
from jax.experimental.pallas import tpu as pltpu


# ----------------------------------------------------------------------------
# Tiling / VMEM planning helpers
# ----------------------------------------------------------------------------
def _lane_pad(d):
    """Round a trailing (lane) dim up to the 128-lane vreg width."""
    return -(-d // 128) * 128


def _step_vmem_bytes(bt, n, d_out, d_in, c):
    """Rough per-grid-step VMEM requirement (f32, lane padding included)."""
    elt = 4
    io = (2 * bt * n * _lane_pad(d_in) + 2 * bt * n * _lane_pad(d_out)) * elt  # dbl-buffered slabs
    x_val = bt * n * _lane_pad(d_in) * elt            # x_ref[...] materialized once
    acc = bt * n * _lane_pad(d_in) * elt              # accumulator scratch
    chunk = 4 * bt * n * c * elt                      # gram + W chunk (x2 headroom for unroll=2)
    return io + x_val + acc + chunk


def _physical_vmem_bytes():
    try:
        cap = getattr(pltpu.get_tpu_info(), "vmem_capacity_bytes", None)
        if cap:
            return int(cap)
    except Exception:
        pass
    return 64 << 20  # conservative fallback == v7x per-core VMEM


def _plan_tiling(b, n, d_out, d_in, budget):
    """Pick (batch_tile, column_chunk) so one grid step fits the VMEM budget."""
    c_cands = [c for c in (512, 256, 128) if c <= n and n % c == 0] or [n]
    bt_cands = [bt for bt in range(min(b, 8), 0, -1) if b % bt == 0]

    def pick(require_multistep):
        for bt in bt_cands:
            if require_multistep and b > 1 and b // bt < 2:
                continue  # keep >= 2 grid steps so both v7x TensorCores get work
            for c in c_cands:
                if _step_vmem_bytes(bt, n, d_out, d_in, c) <= budget:
                    return bt, c
        return None

    return pick(True) or pick(False) or (1, c_cands[-1])


# ----------------------------------------------------------------------------
# Kernel
# ----------------------------------------------------------------------------
def _gbms_kernel(inv_bw2_ref, x_ref, o_ref, acc_ref, *,
                 normalize: bool, chunk: int, out_dim: int, w_dtype):
    # inv_bw2_ref: (1,) f32 in SMEM            (1 / bandwidth^2)
    # x_ref:       (Bt, N, Din) f32 in VMEM    (Din = D, or D+1 with ones column)
    # o_ref:       (Bt, N, D)   f32 in VMEM
    # acc_ref:     (Bt, N, Din) f32 VMEM scratch accumulator
    inv_bw2 = inv_bw2_ref[0]
    _, n, _ = x_ref.shape
    nchunks = n // chunk

    x = x_ref[...]                                  # LHS of every gram chunk
    acc_ref[...] = jnp.zeros_like(acc_ref)

    if normalize:
        a_row = None
    else:
        # a_i = 0.5 * |x_i|^2 / bw^2 (loop-invariant; ones-column constant
        # cancels against the +1/bw^2 it adds to the gram term).
        a_row = 0.5 * inv_bw2 * jnp.sum(x * x, axis=-1, keepdims=True)   # (Bt, N, 1)

    def body(c, carry):
        off = pl.multiple_of(c * chunk, chunk)
        x_c = x_ref[:, pl.ds(off, chunk), :]                             # (Bt, C, Din)
        # Pre-scale the small (Bt, C, Din) chunk so gram arrives already
        # multiplied by 1/bw^2 -> one VPU op per W element below.
        gram_s = jnp.einsum("bnd,bcd->bnc", x, x_c * inv_bw2,
                            preferred_element_type=jnp.float32)          # (Bt, N, C)
        if normalize:
            w_c = jnp.exp(gram_s - inv_bw2)                              # EUP exp
        else:
            a_col = 0.5 * inv_bw2 * jnp.sum(x_c * x_c, axis=-1)          # (Bt, C)
            w_c = jnp.exp(gram_s - a_row - a_col[:, None, :])
        # W symmetric -> W^T @ X == W @ X; ones column gives rowsum(W) for free.
        acc_ref[...] += jnp.einsum("bnc,bcd->bnd",
                                   w_c.astype(w_dtype), x_c.astype(w_dtype),
                                   preferred_element_type=jnp.float32)
        return carry

    if nchunks > 1:
        lax.fori_loop(0, nchunks, body, 0, unroll=2)
    else:
        body(0, 0)

    num = acc_ref[...]
    if normalize:
        # Row scale 1/rowsum(W) cancels under the row L2 norm -> skipped.
        ssq = jnp.sum(num * num, axis=-1, keepdims=True)
        y = num * lax.rsqrt(jnp.maximum(ssq, 1e-24))                     # eps ~ F.normalize 1e-12
        o_ref[...] = y.astype(o_ref.dtype)
    else:
        s = num[:, :, out_dim:out_dim + 1]                               # rowsum(W) from ones col
        o_ref[...] = (num[:, :, :out_dim] / s).astype(o_ref.dtype)


# ----------------------------------------------------------------------------
# Wrapper
# ----------------------------------------------------------------------------
def gbms_rnn(x, bandwidth, *, normalize=True, batch_tile=None, chunk=None,
             w_dtype=None):
    """x: (B, N, D) float;  bandwidth: scalar (learnable parameter)."""
    B, N, D = x.shape
    out_dtype = x.dtype
    x = x.astype(jnp.float32)

    bw = jnp.asarray(bandwidth, jnp.float32)
    inv_bw2 = (1.0 / (bw * bw)).reshape(1)

    if normalize:
        x_in, din = x, D
    else:
        # Append a ones column: W @ [X | 1] yields rowsum(W) on the MXU.
        x_in = jnp.concatenate([x, jnp.ones((B, N, 1), jnp.float32)], axis=-1)
        din = D + 1

    phys = _physical_vmem_bytes()
    budget = min(phys - (8 << 20), 96 << 20)
    bt_auto, c_auto = _plan_tiling(B, N, D, din, budget)
    bt = batch_tile if batch_tile is not None else bt_auto
    C = chunk if chunk is not None else c_auto
    assert B % bt == 0, "batch tile must divide batch"
    assert N % C == 0, "column chunk must divide N"

    need = _step_vmem_bytes(bt, N, D, din, C)
    compiler_kwargs = dict(dimension_semantics=("parallel",))
    if need > (16 << 20):  # above the smallest (v5e) default scoped-VMEM limit
        compiler_kwargs["vmem_limit_bytes"] = int(min(need * 3 // 2, phys - (4 << 20)))

    wdt = jnp.float32 if w_dtype is None else w_dtype
    kernel = functools.partial(_gbms_kernel, normalize=normalize,
                               chunk=C, out_dim=D, w_dtype=wdt)
    return pl.pallas_call(
        kernel,
        out_shape=jax.ShapeDtypeStruct((B, N, D), out_dtype),
        grid=(B // bt,),
        in_specs=[
            pl.BlockSpec(memory_space=pltpu.MemorySpace.SMEM),   # 1/bw^2 scalar
            pl.BlockSpec((bt, N, din), lambda i: (i, 0, 0)),     # X (or [X|1]) batch tile
        ],
        out_specs=pl.BlockSpec((bt, N, D), lambda i: (i, 0, 0)),
        scratch_shapes=[pltpu.VMEM((bt, N, din), jnp.float32)],  # W@X (and rowsum) accumulator
        compiler_params=pltpu.CompilerParams(**compiler_kwargs),
    )(inv_bw2, x_in)


# ----------------------------------------------------------------------------
# Pure-JAX reference mirroring the PyTorch forward
# ----------------------------------------------------------------------------
def gbms_rnn_ref(x, bandwidth, *, normalize=True):
    bw = jnp.asarray(bandwidth, jnp.float32)
    gram = jnp.einsum("bnd,bmd->bnm", x, x)
    if normalize:
        w = jnp.exp((gram - 1.0) / (bw * bw))
    else:
        r = jnp.sum(x * x, axis=-1)
        sq = r[:, :, None] + r[:, None, :] - 2.0 * gram
        w = jnp.exp(-0.5 * sq / (bw * bw))
    s = jnp.sum(w, axis=-1)                                      # (B, N)
    # (X^T @ W @ D^-1)^T : out[b,i,d] = sum_j W[b,j,i] X[b,j,d] / s[b,i]
    out = jnp.einsum("bjn,bjd->bnd", w, x) / s[..., None]
    if normalize:
        nrm = jnp.sqrt(jnp.sum(out * out, axis=-1, keepdims=True))
        out = out / jnp.maximum(nrm, 1e-12)
    return out


if __name__ == "__main__":
    key = jax.random.PRNGKey(0)
    B, N, D = 2, 128, 32
    x = jax.random.normal(key, (B, N, D), dtype=jnp.float32)
    # normalize=True path assumes unit-norm feature rows (so X X^T - 1 <= 0).
    x = x / jnp.linalg.norm(x, axis=-1, keepdims=True)

    bandwidth = jnp.float32(0.1)   # same default init as nn.Parameter(0.1)

    # normalize=True path (module default).
    out = jax.block_until_ready(gbms_rnn(x, bandwidth, normalize=True))
    ref = gbms_rnn_ref(x, bandwidth, normalize=True)
    assert out.shape == (B, N, D)
    assert jnp.allclose(out, ref, atol=1e-5, rtol=1e-5), "normalize=True mismatch"

    # normalize=False (cdist) path.
    out2 = jax.block_until_ready(gbms_rnn(x, bandwidth, normalize=False))
    ref2 = gbms_rnn_ref(x, bandwidth, normalize=False)
    assert jnp.allclose(out2, ref2, atol=1e-5, rtol=1e-5), "normalize=False mismatch"

    print("KERNEL_OK")
</pallas_src>

<mosaic_0001>
module attributes {stable_mosaic.version = 11 : i64} {
  func.func @_gbms_kernel(%arg0: i32, %arg1: memref<1xf32, #tpu.memory_space<smem>>, %arg2: memref<1x128x32xf32, #tpu.memory_space<vmem>>, %arg3: memref<1x128x32xf32, #tpu.memory_space<vmem>>, %arg4: memref<1x128x32xf32, #tpu.memory_space<vmem>>) attributes {dimension_semantics = [#tpu.dimension_semantics<parallel>], iteration_bounds = array<i64: 2>, scalar_prefetch = 0 : i64, scratch_operands = 1 : i64, tpu.core_type = #tpu.core_type<tc>, window_params = [{transform_indices = @transform_0, window_bounds = array<i64: 1>}, {transform_indices = @transform_1, window_bounds = array<i64: 1, 128, 32>}, {transform_indices = @transform_2, window_bounds = array<i64: 1, 128, 32>}]} {
    %c0 = arith.constant 0 : index
    %0 = memref.load %arg1[%c0] : memref<1xf32, #tpu.memory_space<smem>>
    %c0_0 = arith.constant 0 : index
    %c0_1 = arith.constant 0 : index
    %c0_2 = arith.constant 0 : index
    %1 = vector.load %arg2[%c0_0, %c0_1, %c0_2] : memref<1x128x32xf32, #tpu.memory_space<vmem>>, vector<1x128x32xf32>
    %cst = arith.constant 0.000000e+00 : f32
    %2 = vector.broadcast %cst : f32 to vector<1x128x32xf32>
    %c0_3 = arith.constant 0 : index
    %c0_4 = arith.constant 0 : index
    %c0_5 = arith.constant 0 : index
    %3 = vector.load %arg4[%c0_3, %c0_4, %c0_5] : memref<1x128x32xf32, #tpu.memory_space<vmem>>, vector<1x128x32xf32>
    tpu.vector_store %arg4[%c0_3, %c0_4, %c0_5], %2 {strides = array<i32>} : memref<1x128x32xf32, #tpu.memory_space<vmem>>, vector<1x128x32xf32>,
    %c0_i32 = arith.constant 0 : i32
    %4 = tpu.assume_multiple %c0_i32, 128 : i32
    %c0_6 = arith.constant 0 : index
    %5 = arith.index_cast %4 : i32 to index
    %c0_7 = arith.constant 0 : index
    %6 = vector.load %arg2[%c0_6, %5, %c0_7] : memref<1x128x32xf32, #tpu.memory_space<vmem>>, vector<1x128x32xf32>
    %7 = vector.broadcast %0 : f32 to vector<1x128x32xf32>
    %8 = arith.mulf %6, %7 : vector<1x128x32xf32>
    "tpu.trace_start"() <{level = 10 : i32, message = "bnd,bcd->bnc"}> : () -> ()
    %cst_8 = arith.constant dense<0.000000e+00> : vector<1x128x128xf32>
    %9 = tpu.matmul %1, %8, %cst_8 {dimension_numbers = #tpu.dot_dimension_numbers<[2], [2], [1], [1], [0, 0, 0, 1, 1, 1], [0], [0]>} : vector<1x128x32xf32>, vector<1x128x32xf32>, vector<1x128x128xf32> -> vector<1x128x128xf32>
    "tpu.trace_stop"() : () -> ()
    %10 = vector.broadcast %0 : f32 to vector<1x128x128xf32>
    %11 = arith.subf %9, %10 : vector<1x128x128xf32>
    %12 = math.exp %11 : vector<1x128x128xf32>
    %c0_9 = arith.constant 0 : index
    %c0_10 = arith.constant 0 : index
    %c0_11 = arith.constant 0 : index
    %13 = vector.load %arg4[%c0_9, %c0_10, %c0_11] : memref<1x128x32xf32, #tpu.memory_space<vmem>>, vector<1x128x32xf32>
    "tpu.trace_start"() <{level = 10 : i32, message = "bnc,bcd->bnd"}> : () -> ()
    %cst_12 = arith.constant dense<0.000000e+00> : vector<1x128x32xf32>
    %14 = tpu.matmul %12, %6, %cst_12 {dimension_numbers = #tpu.dot_dimension_numbers<[2], [1], [1], [2], [0, 0, 0, 1, 1, 2], [0], [0]>} : vector<1x128x128xf32>, vector<1x128x32xf32>, vector<1x128x32xf32> -> vector<1x128x32xf32>
    "tpu.trace_stop"() : () -> ()
    %15 = arith.addf %13, %14 : vector<1x128x32xf32>
    %c0_13 = arith.constant 0 : index
    %c0_14 = arith.constant 0 : index
    %c0_15 = arith.constant 0 : index
    %16 = vector.load %arg4[%c0_13, %c0_14, %c0_15] : memref<1x128x32xf32, #tpu.memory_space<vmem>>, vector<1x128x32xf32>
    tpu.vector_store %arg4[%c0_13, %c0_14, %c0_15], %15 {strides = array<i32>} : memref<1x128x32xf32, #tpu.memory_space<vmem>>, vector<1x128x32xf32>,
    %c0_16 = arith.constant 0 : index
    %c0_17 = arith.constant 0 : index
    %c0_18 = arith.constant 0 : index
    %17 = vector.load %arg4[%c0_16, %c0_17, %c0_18] : memref<1x128x32xf32, #tpu.memory_space<vmem>>, vector<1x128x32xf32>
    %18 = arith.mulf %17, %17 : vector<1x128x32xf32>
    %cst_19 = arith.constant dense<0.000000e+00> : vector<1x128xf32>
    %19 = vector.multi_reduction <add>, %18, %cst_19 [2] : vector<1x128x32xf32> to vector<1x128xf32>
    %20 = vector.shape_cast %19 : vector<1x128xf32> to vector<1x128x1xf32>
    %cst_20 = arith.constant 1.000000e-24 : f32
    %21 = vector.broadcast %cst_20 : f32 to vector<1x128x1xf32>
    %22 = arith.maximumf %20, %21 : vector<1x128x1xf32>
    %23 = math.rsqrt %22 : vector<1x128x1xf32>
    %24 = vector.broadcast %23 : vector<1x128x1xf32> to vector<1x128x32xf32>
    %25 = arith.mulf %17, %24 : vector<1x128x32xf32>
    %c0_21 = arith.constant 0 : index
    %c0_22 = arith.constant 0 : index
    %c0_23 = arith.constant 0 : index
    %26 = vector.load %arg3[%c0_21, %c0_22, %c0_23] : memref<1x128x32xf32, #tpu.memory_space<vmem>>, vector<1x128x32xf32>
    tpu.vector_store %arg3[%c0_21, %c0_22, %c0_23], %25 {strides = array<i32>} : memref<1x128x32xf32, #tpu.memory_space<vmem>>, vector<1x128x32xf32>,
    return
  }
  func.func @transform_0(%arg0: i32) -> i32 {
    %c0_i32 = arith.constant 0 : i32
    %c0_i32_0 = arith.constant 0 : i32
    return %c0_i32 : i32
  }
  func.func @transform_1(%arg0: i32) -> (i32, i32, i32) {
    %c0_i32 = arith.constant 0 : i32
    %c0_i32_0 = arith.constant 0 : i32
    %c0_i32_1 = arith.constant 0 : i32
    return %arg0, %c0_i32, %c0_i32_0 : i32, i32, i32
  }
  func.func @transform_2(%arg0: i32) -> (i32, i32, i32) {
    %c0_i32 = arith.constant 0 : i32
    %c0_i32_0 = arith.constant 0 : i32
    %c0_i32_1 = arith.constant 0 : i32
    return %arg0, %c0_i32, %c0_i32_0 : i32, i32, i32
  }
}

</mosaic_0001>

<bundles_post_ra>
// kernel: tpu_custom_call.1
= control target key start
LH: loop header
LB: loop body
LE: loop exit
PB: predicated region body
PF: predicated region fallthrough
CT: control target
= control target key end

     0   :  { %s1214_s11 = smov 0   ;;  %s1560_s0 = inlined_call_operand.<no memory space> [shape: f32[1], index: 0, kind: input, shape index: {}]   ;;  %s1561_s1 = inlined_call_operand.vmem [shape: f32[2,128,32], index: 1, kind: input, shape index: {}]   ;;  %s1562_s2 = inlined_call_operand.vmem [shape: f32[2,128,32], index: 2, kind: output, shape index: {}]  }
   0x1   :  { %7 = sst [smem:[#allocation3]] %s1560_s0 }
   0x2 LB: > { %s893_s12 = sadd.s32 4294967295, %s1193_s11   ;;  %p897_p0 = scmp.ge.s32.totalorder %s1193_s11, 1  ;;  %s1193_s11 = sphi %s1214_s11, %s13_s11  }
   0x3   : > { %p113_p1 = scmp.lt.s32.totalorder %s1193_s11, 3 }
   0x5   : > { %p114_p2 = pnand %p897_p0, %p113_p1 }
   0x6   : > { %p135_p3 = scmp.lt.s32.totalorder (!%p114_p2), %s893_s12, 1  ;;  %s145_s13 = sld [smem:[#allocation3]] (!%p114_p2) }
   0x7   : > { %117 = sbr.rel (%p114_p2) target bundleno = 691 (0x2b3), region = 28 }
   0xc   : > { %s1564_s12 = smov (!%p135_p3, %s893_s12), 1  ;;  %vm162_vm0 = vcmask 261120   ;;  %v1235_v1 = vstv %s145_s13  ;;  %v1195_v33 = vmov 0.0  }
   0xd   : > { %s936_s0 = sshll.u32 %s1564_s12, 7  ;;  %164 = vst.msk [vmem:[#allocation2 + $0x8] sm:$0xff] %vm162_vm0, %v1195_v33  ;;  %163 = vst.msk [vmem:[#allocation2] sm:$0xff] %vm162_vm0, %v1195_v33 }
   0xe   : > { %s1230_s16 = scalar_lea.vmem %s1561_s1, %s936_s0  ;;  %165 = vst.msk [vmem:[#allocation2 + $0x10] sm:$0xff] %vm162_vm0, %v1195_v33  ;;  %166 = vst.msk [vmem:[#allocation2 + $0x18] sm:$0xff] %vm162_vm0, %v1195_v33  ;;  %s1507_s19 = scalar_lea.vmem %s1562_s2, %s936_s0 }
   0xf   : > { %v1233_v0 = vld [vmem:[%s1230_s16 + $0x78] sm:$0xff]  ;;  %v1238_v2 = vld [vmem:[%s1230_s16 + $0x70] sm:$0xff]  ;;  %v1246_v5 = vld [vmem:[%s1230_s16 + $0x68] sm:$0xff]  ;;  %167 = vst.msk [vmem:[#allocation2 + $0x20] sm:$0xff] %vm162_vm0, %v1195_v33 }
  0x10   : > { %v211_v3 = vmul.f32 %v1235_v1, %v1233_v0  ;;  %v210_v4 = vmul.f32 %v1235_v1, %v1238_v2  ;;  %1058 = vmatprep.subr.mxu1 %v1233_v0  ;;  %v209_v6 = vmul.f32 %v1235_v1, %v1246_v5  ;;  %v1257_v7 = vld [vmem:[%s1230_s16] sm:$0xff]  ;;  %v1269_v9 = vld [vmem:[%s1230_s16 + $0x58] sm:$0xff]  ;;  %v1277_v11 = vld [vmem:[%s1230_s16 + $0x50] sm:$0xff]  ;;  %168 = vst.msk [vmem:[#allocation2 + $0x28] sm:$0xff] %vm162_vm0, %v1195_v33 }
  0x11   : > { %1059 = vmatpush3.msra.mxu1 %v1233_v0  ;;  %v1261_v8 = vld [vmem:[%s1230_s16 + $0x60] sm:$0xff]  ;;  %1034 = vmatprep.mubr.msk.f32.mxu0 %vm162_vm0, %v1257_v7  ;;  %v1283_v12 = vld [vmem:[%s1230_s16 + $0x48] sm:$0xff]  ;;  %v207_v13 = vmul.f32 %v1235_v1, %v1269_v9  ;;  %v1297_v15 = vld [vmem:[%s1230_s16 + $0x38] sm:$0xff]  ;;  %v206_v16 = vmul.f32 %v1235_v1, %v1277_v11  ;;  %v196_v32 = vmul.f32 %v1235_v1, %v1257_v7 }
  0x12   : > { %1002 = vmatprep.subr.msk.mxu0 %vm162_vm0, %v211_v3  ;;  %1060 = vmatprep.subr.mxu1 %v1238_v2  ;;  %v208_v10 = vmul.f32 %v1235_v1, %v1261_v8  ;;  %v1291_v14 = vld [vmem:[%s1230_s16 + $0x40] sm:$0xff]  ;;  %v185_v17 = vld [vmem:[%s1230_s16 + $0x30] sm:$0xff]  ;;  %v184_v18 = vld [vmem:[%s1230_s16 + $0x28] sm:$0xff]  ;;  %v205_v19 = vmul.f32 %v1235_v1, %v1283_v12  ;;  %v203_v25 = vmul.f32 %v1235_v1, %v1297_v15 }
  0x13   : > { %1003 = vmatpush3.xpose.msk.msra.mxu0 %vm162_vm0, %v211_v3  ;;  %1061 = vmatpush3.msra.mxu1 %v1238_v2  ;;  %v183_v20 = vld [vmem:[%s1230_s16 + $0x20] sm:$0xff]  ;;  %v182_v21 = vld [vmem:[%s1230_s16 + $0x18] sm:$0xff]  ;;  %v204_v22 = vmul.f32 %v1235_v1, %v1291_v14  ;;  %v181_v23 = vld [vmem:[%s1230_s16 + $0x10] sm:$0xff]  ;;  %v202_v26 = vmul.f32 %v1235_v1, %v185_v17  ;;  %v201_v27 = vmul.f32 %v1235_v1, %v184_v18 }
  0x14   : > { %1004 = vmatprep.subr.msk.mxu0 %vm162_vm0, %v210_v4  ;;  %1062 = vmatprep.subr.mxu1 %v1246_v5  ;;  %v180_v24 = vld [vmem:[%s1230_s16 + $0x8] sm:$0xff]  ;;  %v200_v28 = vmul.f32 %v1235_v1, %v183_v20  ;;  %v199_v29 = vmul.f32 %v1235_v1, %v182_v21  ;;  %v198_v30 = vmul.f32 %v1235_v1, %v181_v23 }
  0x15   : > { %1063 = vmatpush3.msra.mxu1 %v1246_v5  ;;  %v197_v31 = vmul.f32 %v1235_v1, %v180_v24  ;;  %169 = vst.msk [vmem:[#allocation2 + $0x30] sm:$0xff] %vm162_vm0, %v1195_v33  ;;  %170 = vst.msk [vmem:[#allocation2 + $0x38] sm:$0xff] %vm162_vm0, %v1195_v33 }
  0x16   : > { %1064 = vmatprep.subr.mxu1 %v1261_v8  ;;  %171 = vst.msk [vmem:[#allocation2 + $0x40] sm:$0xff] %vm162_vm0, %v1195_v33  ;;  %172 = vst.msk [vmem:[#allocation2 + $0x48] sm:$0xff] %vm162_vm0, %v1195_v33 }
  0x17   : > { %1005 = vmatpush3.xpose.msk.msra.mxu0 %vm162_vm0, %v210_v4  ;;  %1065 = vmatpush3.msra.mxu1 %v1261_v8  ;;  %173 = vst.msk [vmem:[#allocation2 + $0x50] sm:$0xff] %vm162_vm0, %v1195_v33  ;;  %174 = vst.msk [vmem:[#allocation2 + $0x58] sm:$0xff] %vm162_vm0, %v1195_v33 }
  0x18   : > { %1006 = vmatprep.subr.msk.mxu0 %vm162_vm0, %v209_v6  ;;  %1066 = vmatprep.subr.mxu1 %v1269_v9  ;;  %175 = vst.msk [vmem:[#allocation2 + $0x60] sm:$0xff] %vm162_vm0, %v1195_v33  ;;  %176 = vst.msk [vmem:[#allocation2 + $0x68] sm:$0xff] %vm162_vm0, %v1195_v33 }
  0x19   : > { %1067 = vmatpush3.msra.mxu1 %v1269_v9  ;;  %177 = vst.msk [vmem:[#allocation2 + $0x70] sm:$0xff] %vm162_vm0, %v1195_v33  ;;  %178 = vst.msk [vmem:[#allocation2 + $0x78] sm:$0xff] %vm162_vm0, %v1195_v33 }
  0x1a   : > { %1068 = vmatprep.subr.mxu1 %v1277_v11 }
  0x1b   : > { %1007 = vmatpush3.xpose.msk.msra.mxu0 %vm162_vm0, %v209_v6  ;;  %1069 = vmatpush3.msra.mxu1 %v1277_v11 }
  0x1c   : > { %1008 = vmatprep.subr.msk.mxu0 %vm162_vm0, %v208_v10  ;;  %1070 = vmatprep.subr.mxu1 %v1283_v12 }
  0x1d   : > { %1071 = vmatpush3.msra.mxu1 %v1283_v12 }
  0x1e   : > { %1072 = vmatprep.subr.mxu1 %v1291_v14 }
  0x1f   : > { %1009 = vmatpush3.xpose.msk.msra.mxu0 %vm162_vm0, %v208_v10  ;;  %1073 = vmatpush3.msra.mxu1 %v1291_v14 }
  0x20   : > { %1010 = vmatprep.subr.msk.mxu0 %vm162_vm0, %v207_v13  ;;  %1074 = vmatprep.subr.mxu1 %v1297_v15 }
  0x21   : > { %1075 = vmatpush3.msra.mxu1 %v1297_v15 }
  0x22   : > { %1076 = vmatprep.subr.mxu1 %v185_v17 }
  0x23   : > { %1011 = vmatpush3.xpose.msk.msra.mxu0 %vm162_vm0, %v207_v13  ;;  %1077 = vmatpush3.msra.mxu1 %v185_v17 }
  0x24   : > { %1012 = vmatprep.subr.msk.mxu0 %vm162_vm0, %v206_v16  ;;  %1078 = vmatprep.subr.mxu1 %v184_v18 }
  0x25   : > { %1079 = vmatpush3.msra.mxu1 %v184_v18 }
  0x26   : > { %1080 = vmatprep.subr.mxu1 %v183_v20 }
  0x27   : > { %1013 = vmatpush3.xpose.msk.msra.mxu0 %vm162_vm0, %v206_v16  ;;  %1081 = vmatpush3.msra.mxu1 %v183_v20 }
  0x28   : > { %1014 = vmatprep.subr.msk.mxu0 %vm162_vm0, %v205_v19  ;;  %1082 = vmatprep.subr.mxu1 %v182_v21 }
  0x29   : > { %1083 = vmatpush3.msra.mxu1 %v182_v21 }
  0x2a   : > { %1084 = vmatprep.subr.mxu1 %v181_v23 }
  0x2b   : > { %1015 = vmatpush3.xpose.msk.msra.mxu0 %vm162_vm0, %v205_v19  ;;  %1085 = vmatpush3.msra.mxu1 %v181_v23 }
  0x2c   : > { %1016 = vmatprep.subr.msk.mxu0 %vm162_vm0, %v204_v22  ;;  %1086 = vmatprep.subr.mxu1 %v180_v24 }
  0x2d   : > { %1087 = vmatpush3.msra.mxu1 %v180_v24 }
  0x2e   : > { %1088 = vmatprep.subr.mxu1 %v1257_v7 }
  0x2f   : > { %1017 = vmatpush3.xpose.msk.msra.mxu0 %vm162_vm0, %v204_v22  ;;  %1089 = vmatpush3.msra.mxu1 %v1257_v7 }
  0x30   : > { %1018 = vmatprep.subr.msk.mxu0 %vm162_vm0, %v203_v25 }
  0x33   : > { %1019 = vmatpush3.xpose.msk.msra.mxu0 %vm162_vm0, %v203_v25 }
  0x34   : > { %1020 = vmatprep.subr.msk.mxu0 %vm162_vm0, %v202_v26 }
  0x37   : > { %1021 = vmatpush3.xpose.msk.msra.mxu0 %vm162_vm0, %v202_v26 }
  0x38   : > { %1022 = vmatprep.subr.msk.mxu0 %vm162_vm0, %v201_v27 }
  0x3b   : > { %1023 = vmatpush3.xpose.msk.msra.mxu0 %vm162_vm0, %v201_v27 }
  0x3c   : > { %1024 = vmatprep.subr.msk.mxu0 %vm162_vm0, %v200_v28 }
  0x3f   : > { %1025 = vmatpush3.xpose.msk.msra.mxu0 %vm162_vm0, %v200_v28 }
  0x40   : > { %1026 = vmatprep.subr.msk.mxu0 %vm162_vm0, %v199_v29 }
  0x43   : > { %1027 = vmatpush3.xpose.msk.msra.mxu0 %vm162_vm0, %v199_v29 }
  0x44   : > { %1028 = vmatprep.subr.msk.mxu0 %vm162_vm0, %v198_v30 }
  0x47   : > { %1029 = vmatpush3.xpose.msk.msra.mxu0 %vm162_vm0, %v198_v30 }
  0x48   : > { %1030 = vmatprep.subr.msk.mxu0 %vm162_vm0, %v197_v31 }
  0x4b   : > { %1031 = vmatpush3.xpose.msk.msra.mxu0 %vm162_vm0, %v197_v31 }
  0x4c   : > { %1032 = vmatprep.subr.msk.mxu0 %vm162_vm0, %v196_v32 }
  0x4f   : > { %1033 = vmatpush3.xpose.msk.msra.mxu0 %vm162_vm0, %v196_v32 }
  0x52   : > { %1035 = vmatmul.mubr.msk.f32.vlgmr.msra.gmra.mxu0 %vm162_vm0, %v180_v24 }
  0x53   : > { %1037 = vmatprep.mubr.msk.f32.mxu0 %vm162_vm0, %v181_v23 }
  0x56   : > { %1038 = vmatmul.mubr.msk.f32.gmra.mxu0 %vm162_vm0, %v182_v21 }
  0x57   : > { %1040 = vmatprep.mubr.msk.f32.mxu0 %vm162_vm0, %v183_v20 }
  0x5a   : > { %1041 = vmatmul.mubr.msk.f32.gmra.mxu0 %vm162_vm0, %v184_v18 }
  0x5b   : > { %1043 = vmatprep.mubr.msk.f32.mxu0 %vm162_vm0, %v185_v17 }
  0x5e   : > { %1044 = vmatmul.mubr.msk.f32.gmra.mxu0 %vm162_vm0, %v1297_v15 }
  0x5f   : > { %1046 = vmatprep.mubr.msk.f32.mxu0 %vm162_vm0, %v1291_v14 }
  0x62   : > { %1047 = vmatmul.mubr.msk.f32.gmra.mxu0 %vm162_vm0, %v1283_v12 }
  0x63   : > { %1049 = vmatprep.mubr.msk.f32.mxu0 %vm162_vm0, %v1277_v11 }
  0x66   : > { %1050 = vmatmul.mubr.msk.f32.gmra.mxu0 %vm162_vm0, %v1269_v9 }
  0x67   : > { %1052 = vmatprep.mubr.msk.f32.mxu0 %vm162_vm0, %v1261_v8 }
  0x6a   : > { %1053 = vmatmul.mubr.msk.f32.gmra.mxu0 %vm162_vm0, %v1246_v5 }
  0x6b   : > { %1055 = vmatprep.mubr.msk.f32.mxu0 %vm162_vm0, %v1238_v2 }
  0x6e   : > { %1056 = vmatmul.mubr.msk.f32.gmra.mxu0 %vm162_vm0, %v1233_v0 }
 0x112   : > { %v1036_v34 = vpop.f32.mrf.mxu0 }
 0x113   : > { %v454_v35 = vsub.f32 %v1036_v34, %v1235_v1  ;;  %v502_v34 = vld [vmem:[#allocation2 + $0x8] sm:$0xff] }
 0x114   : > { %v374_v36 = vpop.f32.mrf.mxu0 }
 0x115   : > { %v453_v37 = vsub.f32 %v374_v36, %v1235_v1  ;;  %v471_v38 = vmul.f32 1.442695, %v454_v35  ;;  %v501_v36 = vld [vmem:[#allocation2] sm:$0xff] }
 0x116   : > { %v1039_v39 = vpop.f32.mrf.mxu0 }
 0x117   : > { %v469_v40 = vmul.f32 1.442695, %v453_v37  ;;  %v456_v41 = vsub.f32 %v1039_v39, %v1235_v1  ;;  %v504_v39 = vld [vmem:[#allocation2 + $0x18] sm:$0xff] }
 0x118   : > { %v384_v42 = vpop.f32.mrf.mxu0 }
 0x119   : > { %1123 = vpow2.f32 %v469_v40  ;;  %v455_v43 = vsub.f32 %v384_v42, %v1235_v1  ;;  %v475_v44 = vmul.f32 1.442695, %v456_v41  ;;  %v503_v42 = vld [vmem:[#allocation2 + $0x10] sm:$0xff] }
 0x11a   : > { %1125 = vpow2.f32 %v471_v38  ;;  %v1042_v45 = vpop.f32.mrf.mxu0 }
 0x11b   : > { %v473_v46 = vmul.f32 1.442695, %v455_v43  ;;  %v458_v47 = vsub.f32 %v1042_v45, %v1235_v1  ;;  %v506_v45 = vld [vmem:[#allocation2 + $0x28] sm:$0xff] }
 0x11c   : > { %v394_v48 = vpop.f32.mrf.mxu0 }
 0x11d   : > { %1127 = vpow2.f32 %v473_v46  ;;  %v479_v49 = vmul.f32 1.442695, %v458_v47  ;;  %v457_v50 = vsub.f32 %v394_v48, %v1235_v1  ;;  %v505_v48 = vld [vmem:[#allocation2 + $0x20] sm:$0xff] }
 0x11e   : > { %1129 = vpow2.f32 %v475_v44  ;;  %v1045_v51 = vpop.f32.mrf.mxu0 }
 0x11f   : > { %v477_v52 = vmul.f32 1.442695, %v457_v50  ;;  %v460_v53 = vsub.f32 %v1045_v51, %v1235_v1  ;;  %1131 = vpow2.f32 %v479_v49  ;;  %v508_v51 = vld [vmem:[#allocation2 + $0x38] sm:$0xff] }
 0x120   : > { %v404_v54 = vpop.f32.mrf.mxu0 }
 0x121   : > { %1133 = vpow2.f32 %v477_v52  ;;  %v483_v55 = vmul.f32 1.442695, %v460_v53  ;;  %v459_v56 = vsub.f32 %v404_v54, %v1235_v1 }
 0x122   : > { %v1048_v57 = vpop.f32.mrf.mxu0 }
 0x123   : > { %v481_v58 = vmul.f32 1.442695, %v459_v56  ;;  %v462_v59 = vsub.f32 %v1048_v57, %v1235_v1  ;;  %1135 = vpow2.f32 %v483_v55  ;;  %v507_v56 = vld [vmem:[#allocation2 + $0x30] sm:$0xff] }
 0x124   : > { %v414_v60 = vpop.f32.mrf.mxu0 }
 0x125   : > { %1137 = vpow2.f32 %v481_v58  ;;  %v487_v61 = vmul.f32 1.442695, %v462_v59  ;;  %v461_v62 = vsub.f32 %v414_v60, %v1235_v1 }
 0x126   : > { %v1124_v63 = vpop.eup %1123  ;;  %v1051_v0 = vpop.f32.mrf.mxu0 }
 0x127   : > { %v1126_v2 = vpop.eup %1125  ;;  %v485_v3 = vmul.f32 1.442695, %v461_v62  ;;  %v464_v4 = vsub.f32 %v1051_v0, %v1235_v1  ;;  %1090 = vmatprep.mubr.f32.mxu1 %v1124_v63  ;;  %1139 = vpow2.f32 %v487_v61  ;;  %v510_v62 = vld [vmem:[#allocation2 + $0x48] sm:$0xff] }
 0x128   : > { %v424_v5 = vpop.f32.mrf.mxu0  ;;  %1091 = vmatmul.mubr.f32.vlgmr.msra.gmra.mxu1 %v1126_v2 }
 0x129   : > { %1141 = vpow2.f32 %v485_v3  ;;  %v491_v6 = vmul.f32 1.442695, %v464_v4  ;;  %v463_v7 = vsub.f32 %v424_v5, %v1235_v1  ;;  %v509_v4 = vld [vmem:[#allocation2 + $0x40] sm:$0xff] }
 0x12a   : > { %v1128_v8 = vpop.eup %1127  ;;  %v1054_v9 = vpop.f32.mrf.mxu0 }
 0x12b   : > { %v1130_v10 = vpop.eup %1129  ;;  %v489_v11 = vmul.f32 1.442695, %v463_v7  ;;  %v466_v12 = vsub.f32 %v1054_v9, %v1235_v1  ;;  %1093 = vmatprep.mubr.f32.mxu1 %v1128_v8  ;;  %1143 = vpow2.f32 %v491_v6 }
 0x12c   : > { %v434_v13 = vpop.f32.mrf.mxu0  ;;  %1094 = vmatmul.mubr.f32.gmra.mxu1 %v1130_v10  ;;  %v1132_v14 = vpop.eup %1131 }
 0x12d   : > { %1145 = vpow2.f32 %v489_v11  ;;  %v495_v15 = vmul.f32 1.442695, %v466_v12  ;;  %v465_v16 = vsub.f32 %v434_v13, %v1235_v1  ;;  %v512_v11 = vld [vmem:[#allocation2 + $0x58] sm:$0xff] }
 0x12e   : > { %v1134_v17 = vpop.eup %1133  ;;  %v1057_v18 = vpop.f32.mrf.mxu0 }
 0x12f   : > { %v493_v19 = vmul.f32 1.442695, %v465_v16  ;;  %v468_v20 = vsub.f32 %v1057_v18, %v1235_v1  ;;  %1096 = vmatprep.mubr.f32.mxu1 %v1134_v17  ;;  %1147 = vpow2.f32 %v495_v15  ;;  %v511_v15 = vld [vmem:[#allocation2 + $0x50] sm:$0xff] }
 0x130   : > { %v444_v21 = vpop.f32.mrf.mxu0  ;;  %1097 = vmatmul.mubr.f32.gmra.mxu1 %v1132_v14  ;;  %v1136_v22 = vpop.eup %1135 }
 0x131   : > { %1149 = vpow2.f32 %v493_v19  ;;  %v499_v23 = vmul.f32 1.442695, %v468_v20  ;;  %v467_v24 = vsub.f32 %v444_v21, %v1235_v1 }
 0x132   : > { %v1138_v25 = vpop.eup %1137 }
 0x133   : > { %v497_v26 = vmul.f32 1.442695, %v467_v24  ;;  %1099 = vmatprep.mubr.f32.mxu1 %v1138_v25  ;;  %1151 = vpow2.f32 %v499_v23 }
 0x134   : > { %1100 = vmatmul.mubr.f32.gmra.mxu1 %v1136_v22  ;;  %v1140_v27 = vpop.eup %1139  ;;  %v514_v22 = vld [vmem:[#allocation2 + $0x68] sm:$0xff] }
 0x135   : > { %1153 = vpow2.f32 %v497_v26 }
 0x136   : > { %v1142_v28 = vpop.eup %1141 }
 0x137   : > { %1102 = vmatprep.mubr.f32.mxu1 %v1142_v28 }
 0x138   : > { %1103 = vmatmul.mubr.f32.gmra.mxu1 %v1140_v27  ;;  %v1144_v29 = vpop.eup %1143  ;;  %v513_v27 = vld [vmem:[#allocation2 + $0x60] sm:$0xff] }
 0x13a   : > { %v1146_v30 = vpop.eup %1145 }
 0x13b   : > { %1105 = vmatprep.mubr.f32.mxu1 %v1146_v30 }
 0x13c   : > { %1106 = vmatmul.mubr.f32.gmra.mxu1 %v1144_v29  ;;  %v1148_v31 = vpop.eup %1147 }
 0x13e   : > { %v1150_v32 = vpop.eup %1149 }
 0x13f   : > { %1108 = vmatprep.mubr.f32.mxu1 %v1150_v32 }
 0x140   : > { %1109 = vmatmul.mubr.f32.gmra.mxu1 %v1148_v31  ;;  %v1152_v33 = vpop.eup %1151 }
 0x142   : > { %v1154_v1 = vpop.eup %1153 }
 0x143   : > { %1111 = vmatprep.mubr.f32.mxu1 %v1154_v1  ;;  %v516_v1 = vld [vmem:[#allocation2 + $0x78] sm:$0xff] }
 0x144   : > { %1112 = vmatmul.mubr.f32.gmra.mxu1 %v1152_v33 }
 0x1e8   : > { %v1092_v35 = vpop.f32.mrf.mxu1 }
 0x1e9   : > { %v663_v37 = vadd.f32 %v1092_v35, %v502_v34 }
 0x1ea   : > { %v583_v38 = vpop.f32.mrf.mxu1 }
 0x1eb   : > { %679 = vst.msk [vmem:[#allocation2 + $0x8] sm:$0xff] %vm162_vm0, %v663_v37  ;;  %v662_v40 = vadd.f32 %v583_v38, %v501_v36  ;;  %v515_v38 = vld [vmem:[#allocation2 + $0x70] sm:$0xff] }
 0x1ec   : > { %v1095_v41 = vpop.f32.mrf.mxu1 }
 0x1ed   : > { %678 = vst.msk [vmem:[#allocation2] sm:$0xff] %vm162_vm0, %v662_v40  ;;  %v665_v43 = vadd.f32 %v1095_v41, %v504_v39 }
 0x1ee   : > { %v593_v44 = vpop.f32.mrf.mxu1 }
 0x1ef   : > { %681 = vst.msk [vmem:[#allocation2 + $0x18] sm:$0xff] %vm162_vm0, %v665_v43  ;;  %v664_v46 = vadd.f32 %v593_v44, %v503_v42 }
 0x1f0   : > { %v1098_v47 = vpop.f32.mrf.mxu1 }
 0x1f1   : > { %680 = vst.msk [vmem:[#allocation2 + $0x10] sm:$0xff] %vm162_vm0, %v664_v46  ;;  %v667_v49 = vadd.f32 %v1098_v47, %v506_v45 }
 0x1f2   : > { %v603_v50 = vpop.f32.mrf.mxu1  ;;  %v1410_v52 = vld [vmem:[#allocation2 + $0x8] sm:$0xff] }
 0x1f3   : > { %683 = vst.msk [vmem:[#allocation2 + $0x28] sm:$0xff] %vm162_vm0, %v667_v49  ;;  %v666_v53 = vadd.f32 %v603_v50, %v505_v48  ;;  %v711_v54 = vmul.f32 %v1410_v52, %v1410_v52 }
 0x1f4   : > { %v1101_v55 = vpop.f32.mrf.mxu1  ;;  %v1415_v57 = vld [vmem:[#allocation2] sm:$0xff] }
 0x1f5   : > { %682 = vst.msk [vmem:[#allocation2 + $0x20] sm:$0xff] %vm162_vm0, %v666_v53  ;;  %v669_v58 = vadd.f32 %v1101_v55, %v508_v51  ;;  %v729_v59 = vsel %vm162_vm0, %v711_v54, 0.0  ;;  %v710_v60 = vmul.f32 %v1415_v57, %v1415_v57 }
 0x1f6   : > { %730 = vadd.xlane.f32.xlu0 %v729_v59  ;;  %v613_v61 = vpop.f32.mrf.mxu1  ;;  %v1421_v63 = vld [vmem:[#allocation2 + $0x18] sm:$0xff] }
 0x1f7   : > { %685 = vst.msk [vmem:[#allocation2 + $0x38] sm:$0xff] %vm162_vm0, %v669_v58  ;;  %v668_v0 = vadd.f32 %v613_v61, %v507_v56  ;;  %v713_v2 = vmul.f32 %v1421_v63, %v1421_v63  ;;  %v726_v7 = vsel %vm162_vm0, %v710_v60, 0.0 }
 0x1f8   : > { %v1104_v3 = vpop.f32.mrf.mxu1  ;;  %v1426_v5 = vld [vmem:[#allocation2 + $0x10] sm:$0xff] }
 0x1f9   : > { %684 = vst.msk [vmem:[#allocation2 + $0x30] sm:$0xff] %vm162_vm0, %v668_v0  ;;  %v671_v6 = vadd.f32 %v1104_v3, %v510_v62  ;;  %v735_v8 = vsel %vm162_vm0, %v713_v2, 0.0  ;;  %v712_v9 = vmul.f32 %v1426_v5, %v1426_v5 }
 0x1fa   : > { %727 = vadd.xlane.f32.xlu0 %v726_v7  ;;  %736 = vadd.xlane.f32.xlu1 %v735_v8  ;;  %v623_v10 = vpop.f32.mrf.mxu1  ;;  %v1433_v12 = vld [vmem:[#allocation2 + $0x28] sm:$0xff] }
 0x1fb   : > { %687 = vst.msk [vmem:[#allocation2 + $0x48] sm:$0xff] %vm162_vm0, %v671_v6  ;;  %v670_v13 = vadd.f32 %v623_v10, %v509_v4  ;;  %v732_v18 = vsel %vm162_vm0, %v712_v9, 0.0  ;;  %v715_v20 = vmul.f32 %v1433_v12, %v1433_v12 }
 0x1fc   : > { %v1107_v14 = vpop.f32.mrf.mxu1  ;;  %v1436_v16 = vld [vmem:[#allocation2 + $0x20] sm:$0xff] }
 0x1fd   : > { %686 = vst.msk [vmem:[#allocation2 + $0x40] sm:$0xff] %vm162_vm0, %v670_v13  ;;  %v673_v17 = vadd.f32 %v1107_v14, %v512_v11  ;;  %v714_v19 = vmul.f32 %v1436_v16, %v1436_v16  ;;  %v741_v30 = vsel %vm162_vm0, %v715_v20, 0.0 }
 0x1fe   : > { %733 = vadd.xlane.f32.xlu1 %v732_v18  ;;  %v633_v21 = vpop.f32.mrf.mxu1  ;;  %v1444_v23 = vld [vmem:[#allocation2 + $0x38] sm:$0xff] }
 0x1ff   : > { %689 = vst.msk [vmem:[#allocation2 + $0x58] sm:$0xff] %vm162_vm0, %v673_v17  ;;  %v672_v24 = vadd.f32 %v633_v21, %v511_v15  ;;  %v738_v25 = vsel %vm162_vm0, %v714_v19, 0.0  ;;  %v717_v32 = vmul.f32 %v1444_v23, %v1444_v23 }
 0x200   : > { %739 = vadd.xlane.f32.xlu0 %v738_v25  ;;  %v1110_v26 = vpop.f32.mrf.mxu1  ;;  %v1448_v28 = vld [vmem:[#allocation2 + $0x30] sm:$0xff] }
 0x201   : > { %688 = vst.msk [vmem:[#allocation2 + $0x50] sm:$0xff] %vm162_vm0, %v672_v24  ;;  %v675_v29 = vadd.f32 %v1110_v26, %v514_v22  ;;  %v716_v31 = vmul.f32 %v1448_v28, %v1448_v28  ;;  %v747_v41 = vsel %vm162_vm0, %v717_v32, 0.0 }
 0x202   : > { %742 = vadd.xlane.f32.xlu1 %v741_v30  ;;  %v643_v33 = vpop.f32.mrf.mxu1  ;;  %v1456_v34 = vld [vmem:[#allocation2 + $0x48] sm:$0xff] }
 0x203   : > { %691 = vst.msk [vmem:[#allocation2 + $0x68] sm:$0xff] %vm162_vm0, %v675_v29  ;;  %v674_v35 = vadd.f32 %v643_v33, %v513_v27  ;;  %v744_v36 = vsel %vm162_vm0, %v716_v31, 0.0  ;;  %v719_v43 = vmul.f32 %v1456_v34, %v1456_v34 }
 0x204   : > { %745 = vadd.xlane.f32.xlu0 %v744_v36  ;;  %v1113_v37 = vpop.f32.mrf.mxu1  ;;  %v1460_v39 = vld [vmem:[#allocation2 + $0x40] sm:$0xff] }
 0x205   : > { %690 = vst.msk [vmem:[#allocation2 + $0x60] sm:$0xff] %vm162_vm0, %v674_v35  ;;  %v677_v40 = vadd.f32 %v1113_v37, %v516_v1  ;;  %v718_v42 = vmul.f32 %v1460_v39, %v1460_v39  ;;  %v753_v49 = vsel %vm162_vm0, %v719_v43, 0.0 }
 0x206   : > { %748 = vadd.xlane.f32.xlu1 %v747_v41  ;;  %v653_v44 = vpop.f32.mrf.mxu1  ;;  %v1468_v45 = vld [vmem:[#allocation2 + $0x58] sm:$0xff] }
 0x207   : > { %693 = vst.msk [vmem:[#allocation2 + $0x78] sm:$0xff] %vm162_vm0, %v677_v40  ;;  %v676_v46 = vadd.f32 %v653_v44, %v515_v38  ;;  %v750_v47 = vsel %vm162_vm0, %v718_v42, 0.0  ;;  %v721_v51 = vmul.f32 %v1468_v45, %v1468_v45 }
 0x208   : > { %751 = vadd.xlane.f32.xlu0 %v750_v47  ;;  %v1472_v48 = vld [vmem:[#allocation2 + $0x50] sm:$0xff] }
 0x209   : > { %692 = vst.msk [vmem:[#allocation2 + $0x70] sm:$0xff] %vm162_vm0, %v676_v46  ;;  %v720_v50 = vmul.f32 %v1472_v48, %v1472_v48  ;;  %v759_v56 = vsel %vm162_vm0, %v721_v51, 0.0 }
 0x20a   : > { %754 = vadd.xlane.f32.xlu1 %v753_v49  ;;  %v1480_v53 = vld [vmem:[#allocation2 + $0x68] sm:$0xff] }
 0x20b   : > { %v756_v54 = vsel %vm162_vm0, %v720_v50, 0.0  ;;  %v723_v59 = vmul.f32 %v1480_v53, %v1480_v53 }
 0x20c   : > { %757 = vadd.xlane.f32.xlu0 %v756_v54  ;;  %v1483_v55 = vld [vmem:[#allocation2 + $0x60] sm:$0xff] }
 0x20d   : > { %v722_v58 = vmul.f32 %v1483_v55, %v1483_v55  ;;  %v765_v0 = vsel %vm162_vm0, %v723_v59, 0.0 }
 0x20e   : > { %760 = vadd.xlane.f32.xlu1 %v759_v56  ;;  %v1490_v60 = vld [vmem:[#allocation2 + $0x78] sm:$0xff] }
 0x20f   : > { %v762_v61 = vsel %vm162_vm0, %v722_v58, 0.0  ;;  %v725_v3 = vmul.f32 %v1490_v60, %v1490_v60 }
 0x210   : > { %763 = vadd.xlane.f32.xlu0 %v762_v61  ;;  %v1493_v62 = vld [vmem:[#allocation2 + $0x70] sm:$0xff] }
 0x211   : > { %v724_v2 = vmul.f32 %v1493_v62, %v1493_v62  ;;  %v771_v6 = vsel %vm162_vm0, %v725_v3, 0.0 }
 0x212   : > { %766 = vadd.xlane.f32.xlu1 %v765_v0 }
 0x213   : > { %v768_v4 = vsel %vm162_vm0, %v724_v2, 0.0 }
 0x214   : > { %769 = vadd.xlane.f32.xlu0 %v768_v4 }
 0x216   : > { %772 = vadd.xlane.f32.xlu1 %v771_v6 }
 0x27f   : > { %v731_v7 = vpop.xlane.xlu0 %730 }
 0x280   : > { %v775_v8 = vmax.f32 %v731_v7, 1e-24 }
 0x282   : > { %1155 = vrsqrt.f32 %v775_v8 }
 0x283   : > { %v728_v9 = vpop.xlane.xlu0 %727  ;;  %v737_v10 = vpop.xlane.xlu1 %736 }
 0x284   : > { %v774_v11 = vmax.f32 %v728_v9, 1e-24  ;;  %v777_v13 = vmax.f32 %v737_v10, 1e-24 }
 0x286   : > { %1157 = vrsqrt.f32 %v774_v11 }
 0x287   : > { %1159 = vrsqrt.f32 %v777_v13  ;;  %v734_v14 = vpop.xlane.xlu1 %733 }
 0x288   : > { %v776_v15 = vmax.f32 %v734_v14, 1e-24 }
 0x289   : > { %v740_v17 = vpop.xlane.xlu0 %739 }
 0x28a   : > { %1161 = vrsqrt.f32 %v776_v15  ;;  %v778_v18 = vmax.f32 %v740_v17, 1e-24 }
 0x28b   : > { %v743_v19 = vpop.xlane.xlu1 %742 }
 0x28c   : > { %1163 = vrsqrt.f32 %v778_v18  ;;  %v779_v20 = vmax.f32 %v743_v19, 1e-24 }
 0x28d   : > { %v746_v21 = vpop.xlane.xlu0 %745 }
 0x28e   : > { %1165 = vrsqrt.f32 %v779_v20  ;;  %v780_v22 = vmax.f32 %v746_v21, 1e-24 }
 0x28f   : > { %v1156_v24 = vpop.eup %1155  ;;  %v749_v25 = vpop.xlane.xlu1 %748 }
 0x290   : > { %v807_v26 = vmul.f32 %v1156_v24, %v1410_v52  ;;  %1167 = vrsqrt.f32 %v780_v22  ;;  %v781_v27 = vmax.f32 %v749_v25, 1e-24 }
 0x291   : > { %v752_v29 = vpop.xlane.xlu0 %751 }
 0x292   : > { %823 = vst.msk [vmem:[%s1507_s19 + $0x8] sm:$0xff] %vm162_vm0, %v807_v26  ;;  %1169 = vrsqrt.f32 %v781_v27  ;;  %v782_v30 = vmax.f32 %v752_v29, 1e-24 }
 0x293   : > { %v1158_v31 = vpop.eup %1157  ;;  %v755_v32 = vpop.xlane.xlu1 %754 }
 0x294   : > { %v1160_v33 = vpop.eup %1159  ;;  %v806_v1 = vmul.f32 %v1158_v31, %v1415_v57  ;;  %1171 = vrsqrt.f32 %v782_v30  ;;  %v783_v35 = vmax.f32 %v755_v32, 1e-24 }
 0x295   : > { %v809_v36 = vmul.f32 %v1160_v33, %v1421_v63  ;;  %v758_v37 = vpop.xlane.xlu0 %757 }
 0x296   : > { %822 = vst.msk [vmem:[%s1507_s19] sm:$0xff] %vm162_vm0, %v806_v1  ;;  %1173 = vrsqrt.f32 %v783_v35  ;;  %v784_v52 = vmax.f32 %v758_v37, 1e-24 }
 0x297   : > { %v1162_v38 = vpop.eup %1161  ;;  %825 = vst.msk [vmem:[%s1507_s19 + $0x18] sm:$0xff] %vm162_vm0, %v809_v36  ;;  %v761_v40 = vpop.xlane.xlu1 %760 }
 0x298   : > { %v808_v41 = vmul.f32 %v1162_v38, %v1426_v5  ;;  %1175 = vrsqrt.f32 %v784_v52  ;;  %v785_v57 = vmax.f32 %v761_v40, 1e-24 }
 0x299   : > { %v1164_v42 = vpop.eup %1163  ;;  %v764_v43 = vpop.xlane.xlu0 %763 }
 0x29a   : > { %824 = vst.msk [vmem:[%s1507_s19 + $0x10] sm:$0xff] %vm162_vm0, %v808_v41  ;;  %v810_v63 = vmul.f32 %v1164_v42, %v1436_v16  ;;  %1177 = vrsqrt.f32 %v785_v57  ;;  %v786_v44 = vmax.f32 %v764_v43, 1e-24 }
 0x29b   : > { %v1166_v46 = vpop.eup %1165  ;;  %v767_v47 = vpop.xlane.xlu1 %766 }
 0x29c   : > { %826 = vst.msk [vmem:[%s1507_s19 + $0x20] sm:$0xff] %vm162_vm0, %v810_v63  ;;  %v811_v49 = vmul.f32 %v1166_v46, %v1433_v12  ;;  %1179 = vrsqrt.f32 %v786_v44  ;;  %v787_v5 = vmax.f32 %v767_v47, 1e-24 }
 0x29d   : > { %v1168_v50 = vpop.eup %1167  ;;  %v770_v51 = vpop.xlane.xlu0 %769 }
 0x29e   : > { %827 = vst.msk [vmem:[%s1507_s19 + $0x28] sm:$0xff] %vm162_vm0, %v811_v49  ;;  %v812_v54 = vmul.f32 %v1168_v50, %v1448_v28  ;;  %1181 = vrsqrt.f32 %v787_v5  ;;  %v788_v16 = vmax.f32 %v770_v51, 1e-24 }
 0x29f   : > { %v1170_v56 = vpop.eup %1169  ;;  %v773_v58 = vpop.xlane.xlu1 %772 }
 0x2a0   : > { %828 = vst.msk [vmem:[%s1507_s19 + $0x30] sm:$0xff] %vm162_vm0, %v812_v54  ;;  %v813_v12 = vmul.f32 %v1170_v56, %v1444_v23  ;;  %1183 = vrsqrt.f32 %v788_v16  ;;  %v789_v59 = vmax.f32 %v773_v58, 1e-24 }
 0x2a1   : > { %v1172_v61 = vpop.eup %1171 }
 0x2a2   : > { %829 = vst.msk [vmem:[%s1507_s19 + $0x38] sm:$0xff] %vm162_vm0, %v813_v12  ;;  %v814_v0 = vmul.f32 %v1172_v61, %v1460_v39  ;;  %1185 = vrsqrt.f32 %v789_v59 }
 0x2a3   : > { %v1174_v28 = vpop.eup %1173 }
 0x2a4   : > { %830 = vst.msk [vmem:[%s1507_s19 + $0x40] sm:$0xff] %vm162_vm0, %v814_v0  ;;  %v815_v2 = vmul.f32 %v1174_v28, %v1456_v34 }
 0x2a5   : > { %v1176_v3 = vpop.eup %1175 }
 0x2a6   : > { %831 = vst.msk [vmem:[%s1507_s19 + $0x48] sm:$0xff] %vm162_vm0, %v815_v2  ;;  %v816_v23 = vmul.f32 %v1176_v3, %v1472_v48 }
 0x2a7   : > { %v1178_v4 = vpop.eup %1177 }
 0x2a8   : > { %832 = vst.msk [vmem:[%s1507_s19 + $0x50] sm:$0xff] %vm162_vm0, %v816_v23  ;;  %v817_v6 = vmul.f32 %v1178_v4, %v1468_v45 }
 0x2a9   : > { %v1180_v39 = vpop.eup %1179 }
 0x2aa   : > { %833 = vst.msk [vmem:[%s1507_s19 + $0x58] sm:$0xff] %vm162_vm0, %v817_v6  ;;  %v818_v7 = vmul.f32 %v1180_v39, %v1483_v55 }
 0x2ab   : > { %v1182_v8 = vpop.eup %1181 }
 0x2ac   : > { %834 = vst.msk [vmem:[%s1507_s19 + $0x60] sm:$0xff] %vm162_vm0, %v818_v7  ;;  %v819_v34 = vmul.f32 %v1182_v8, %v1480_v53 }
 0x2ad   : > { %v1184_v9 = vpop.eup %1183 }
 0x2ae   : > { %835 = vst.msk [vmem:[%s1507_s19 + $0x68] sm:$0xff] %vm162_vm0, %v819_v34  ;;  %v820_v48 = vmul.f32 %v1184_v9, %v1493_v62 }
 0x2af   : > { %v1186_v10 = vpop.eup %1185 }
 0x2b0   : > { %836 = vst.msk [vmem:[%s1507_s19 + $0x70] sm:$0xff] %vm162_vm0, %v820_v48  ;;  %v821_v45 = vmul.f32 %v1186_v10, %v1490_v60 }
 0x2b2   : > { %837 = vst.msk [vmem:[%s1507_s19 + $0x78] sm:$0xff] %vm162_vm0, %v821_v45 }
 0x2b3 PF: > { %s13_s11 = sadd.s32 1, %s1193_s11  }
 0x2b4   : > { %p10_p4 = scmp.ge.s32.totalorder %s13_s11, 4  }
 0x2b6   :  { %12 = sbr.rel (!%p10_p4) target bundleno = 2 (0x2), region = 58 }

</bundles_post_ra>
